<compile_context>
chip_gen: v7x
topology: tpu7x:2x2x1
jax: 0.10.0
libtpu: 0.0.40
codegen_flags: <defaults>
</compile_context>

<pallas_src>
import functools
import math
import random
from enum import Enum

import jax
import jax.numpy as jnp
from jax.experimental import pallas as pl
from jax.experimental.pallas import tpu as pltpu


class ActivationType(Enum):
    RELU = "relu"
    GELU = "gelu"
    TANH = "tanh"
    SIGMOID = "sigmoid"
    SWISH = "swish"
    SINE = "sine"
    COSINE = "cosine"
    GAUSSIAN = "gaussian"
    STEP = "step"
    LINEAR = "linear"
    ABS = "abs"
    SQUARE = "square"
    SOFTPLUS = "softplus"
    ELU = "elu"
    LEAKY_RELU = "leaky_relu"


# pure-jnp activation bodies (semantics match the torch registry exactly)
_ACT_FNS = {
    ActivationType.RELU: lambda x: jnp.maximum(x, 0.0),
    # torch.nn.functional.gelu default is the exact (erf-based) variant
    ActivationType.GELU: lambda x: jax.nn.gelu(x, approximate=False),
    ActivationType.TANH: jnp.tanh,
    ActivationType.SIGMOID: jax.nn.sigmoid,
    ActivationType.SWISH: lambda x: x * jax.nn.sigmoid(x),
    ActivationType.SOFTPLUS: lambda x: jnp.logaddexp(x, 0.0),
    ActivationType.ELU: lambda x: jnp.where(x > 0, x, jnp.expm1(x)),
    # the torch registry explicitly uses negative_slope=0.1 (not torch default 0.01)
    ActivationType.LEAKY_RELU: lambda x: jnp.where(x > 0, x, 0.1 * x),
    ActivationType.SINE: jnp.sin,
    ActivationType.COSINE: jnp.cos,
    ActivationType.GAUSSIAN: lambda x: jnp.exp(-(x ** 2)),
    ActivationType.STEP: lambda x: (x > 0).astype(jnp.float32),
    ActivationType.LINEAR: lambda x: x,
    ActivationType.ABS: jnp.abs,
    ActivationType.SQUARE: lambda x: x ** 2,
}

_LANE = 128
# Below this element count, pallas_call dispatch + pipeline prologue dominates;
# plain jnp (fused by XLA) is faster.
_SMALL_ELEMS = 1 << 16  # 64K elements


def _default_tile_bytes() -> int:
    """Per-generation per-step tile size (bytes of the widest operand)."""
    try:
        kind = jax.devices()[0].device_kind.lower()
    except Exception:  # pragma: no cover - defensive; default backend is TPU
        kind = ""
    if "v6" in kind or "v7" in kind:
        # 4 MiB tiles: 2-in + 2-out double buffers <= 16 MiB scoped VMEM,
        # well inside the 32 MiB scoped default on v6e and v7x.
        return 4 << 20
    # v5e (16 MiB scoped default) and unknown chips: stay at 2 MiB with headroom.
    return 2 << 20


_TILE_BYTES = _default_tile_bytes()


def _sublane_multiple(dtype) -> int:
    # packed sublane multiple: 8 for 4-byte, 16 for 2-byte, 32 for 1-byte dtypes
    return max(8, 32 // max(1, jnp.dtype(dtype).itemsize))


def _activation_kernel(x_ref, o_ref, *, act_type: ActivationType):
    o_ref[...] = _ACT_FNS[act_type](x_ref[...]).astype(o_ref.dtype)


def _apply_pallas(slab: jnp.ndarray, act: ActivationType, out_dtype) -> jnp.ndarray:
    """Run the activation kernel over a lane-dense (rows, 128) slab."""
    rows, _ = slab.shape
    in_dtype = slab.dtype
    eff_itemsize = max(jnp.dtype(in_dtype).itemsize, jnp.dtype(out_dtype).itemsize)
    sub = max(_sublane_multiple(in_dtype), _sublane_multiple(out_dtype))

    # tile sized in bytes (dtype-aware), rounded down to the sublane multiple
    max_block_rows = max(sub, (_TILE_BYTES // (_LANE * eff_itemsize)) // sub * sub)

    # Always emit >= 2 balanced blocks (even count) so both v7x TensorCores get
    # an equal share of this memory-bound kernel via the "parallel" grid axis.
    min_blocks = 2 if rows >= 2 * sub else 1
    n_blocks = max(pl.cdiv(rows, max_block_rows), min_blocks)
    if n_blocks > 1 and n_blocks % 2:
        n_blocks += 1

    if n_blocks == 1:
        block_rows = rows  # block equals full array dim -> exempt from (8,128) rule
    else:
        block_rows = pl.cdiv(pl.cdiv(rows, n_blocks), sub) * sub
    grid = (pl.cdiv(rows, block_rows),)

    kernel = functools.partial(_activation_kernel, act_type=act)
    return pl.pallas_call(
        kernel,
        out_shape=jax.ShapeDtypeStruct((rows, _LANE), out_dtype),
        grid_spec=pltpu.PrefetchScalarGridSpec(
            num_scalar_prefetch=0,
            grid=grid,
            in_specs=[pl.BlockSpec((block_rows, _LANE), lambda i: (i, 0))],
            out_specs=pl.BlockSpec((block_rows, _LANE), lambda i: (i, 0)),
        ),
        compiler_params=pltpu.CompilerParams(
            # single independent axis: megacore-shardable on v7x
            dimension_semantics=("parallel",),
        ),
    )(slab)


class EvolvableActivation:
    """Pallas TPU version of the evolvable activation layer.

    The activation type is a static (Python-level) attribute — the kernel is
    specialized per activation, exactly mirroring the torch module, where the
    activation choice is not a tensor op.
    """

    def __init__(self, initial_type: ActivationType = ActivationType.RELU):
        self.activation_type = initial_type

    def set_activation(self, activation_type: ActivationType):
        self.activation_type = activation_type

    def mutate_activation(self):
        # host-side RNG, like the torch registry's np.random.choice
        self.activation_type = random.choice(list(ActivationType))

    def clone(self) -> "EvolvableActivation":
        return EvolvableActivation(self.activation_type)

    def __call__(self, x: jnp.ndarray) -> jnp.ndarray:
        act = self.activation_type

        # identity: no kernel launch, no HBM read+write copy
        if act == ActivationType.LINEAR:
            return x

        orig_shape = x.shape
        n = math.prod(orig_shape)
        out_dtype = jnp.float32 if act == ActivationType.STEP else x.dtype
        if n == 0:
            return jnp.zeros(orig_shape, out_dtype)

        # small-input fallback: plain jnp, fused by XLA; pallas dispatch overhead
        # would dominate here.
        if n < _SMALL_ELEMS:
            return _ACT_FNS[act](x).astype(out_dtype)

        # lane-dense (rows, 128) slab over the 128-aligned prefix; the <=127
        # element tail (if any) is computed outside the kernel — no full-array
        # pad / slice HBM passes.
        aligned_n = (n // _LANE) * _LANE
        flat = x.reshape(-1)
        slab = flat[:aligned_n].reshape(aligned_n // _LANE, _LANE)
        out_main = _apply_pallas(slab, act, out_dtype)

        if aligned_n == n:
            return out_main.reshape(orig_shape)

        tail = _ACT_FNS[act](flat[aligned_n:]).astype(out_dtype)
        return jnp.concatenate([out_main.reshape(-1), tail]).reshape(orig_shape)


if __name__ == "__main__":
    key = jax.random.PRNGKey(0)
    k0, k1, k2, k3 = jax.random.split(key, 4)
    inputs = [
        # small NCHW input consistent with conv-style usage -> jnp fallback path
        jax.random.normal(k0, (2, 4, 16, 16), dtype=jnp.float32),
        # tiny ragged input -> jnp fallback path
        jax.random.normal(k1, (3, 5, 7), dtype=jnp.float32),
        # 128-aligned, above the small-input threshold -> Pallas path
        jax.random.normal(k2, (4, 16, 64, 64), dtype=jnp.float32),
        # ragged, above the threshold -> Pallas prefix + jnp tail path
        jax.random.normal(k3, (517, 259), dtype=jnp.float32),
    ]

    layer = EvolvableActivation(ActivationType.RELU)

    ok = True
    for act in ActivationType:
        layer.set_activation(act)
        for inp in inputs:
            y = jax.block_until_ready(layer(inp))
            y_ref = jax.block_until_ready(_ACT_FNS[act](inp))
            if (
                y.shape != y_ref.shape
                or y.dtype != y_ref.dtype
                or not jnp.allclose(y, y_ref, atol=1e-5, rtol=1e-5)
            ):
                ok = False
                print(f"MISMATCH for {act} on shape {inp.shape}")

    if ok:
        print("KERNEL_OK")
</pallas_src>

<mosaic_0001>
module attributes {stable_mosaic.version = 11 : i64} {
  func.func @_activation_kernel(%arg0: i32, %arg1: memref<1024x128xf32, #tpu.memory_space<vmem>>, %arg2: memref<1024x128xf32, #tpu.memory_space<vmem>>) attributes {dimension_semantics = [#tpu.dimension_semantics<parallel>], iteration_bounds = array<i64: 2>, scalar_prefetch = 0 : i64, scratch_operands = 0 : i64, tpu.core_type = #tpu.core_type<tc>, window_params = [{transform_indices = @transform_0, window_bounds = array<i64: 1024, 128>}, {transform_indices = @transform_1, window_bounds = array<i64: 1024, 128>}]} {
    %c0 = arith.constant 0 : index
    %c0_0 = arith.constant 0 : index
    %0 = vector.load %arg1[%c0, %c0_0] : memref<1024x128xf32, #tpu.memory_space<vmem>>, vector<1024x128xf32>
    %cst = arith.constant 0.000000e+00 : f32
    %1 = vector.broadcast %cst : f32 to vector<1024x128xf32>
    %2 = arith.maximumf %0, %1 : vector<1024x128xf32>
    %c0_1 = arith.constant 0 : index
    %c0_2 = arith.constant 0 : index
    %3 = vector.load %arg2[%c0_1, %c0_2] : memref<1024x128xf32, #tpu.memory_space<vmem>>, vector<1024x128xf32>
    tpu.vector_store %arg2[%c0_1, %c0_2], %2 {strides = array<i32>} : memref<1024x128xf32, #tpu.memory_space<vmem>>, vector<1024x128xf32>,
    return
  }
  func.func @transform_0(%arg0: i32) -> (i32, i32) {
    %c0_i32 = arith.constant 0 : i32
    %c0_i32_0 = arith.constant 0 : i32
    return %arg0, %c0_i32 : i32, i32
  }
  func.func @transform_1(%arg0: i32) -> (i32, i32) {
    %c0_i32 = arith.constant 0 : i32
    %c0_i32_0 = arith.constant 0 : i32
    return %arg0, %c0_i32 : i32, i32
  }
}

</mosaic_0001>

<bundles_post_ra>
// kernel: tpu_custom_call.1
= control target key start
LH: loop header
LB: loop body
LE: loop exit
PB: predicated region body
PF: predicated region fallthrough
CT: control target
= control target key end

     0   :  { %6 = vsyncpa [#allocation3], 0  ;;  %s1215_s0 = inlined_call_operand.hbm [shape: f32[2048,128], index: 0, kind: input, shape index: {}]   ;;  %s1216_s1 = inlined_call_operand.hbm [shape: f32[2048,128], index: 1, kind: output, shape index: {}]  }
   0x1   :  { %8 = vsyncpa [#allocation3 + $0x1], 0 }
   0x2   :  { %9 = vsyncpa [#allocation4], 0 }
   0x3   :  { %11 = vsyncpa [#allocation4 + $0x1], 0  ;;  %s788_s6 = smov 0   ;;  %s790_s7 = smov 0  }
   0x4   :  { %s792_s8 = smov 0   ;;  %s794_s9 = smov 0  }
   0x5 LB: > { %s809_s10 = sadd.s32 4294967295, %s770_s9   ;;  %s608_s11 = sadd.s32 4294967294, %s770_s9   ;;  %s770_s9 = sphi %s794_s9, %s1229_s9   ;;  %s766_s8 = sphi %s792_s8, %s1228_s8   ;;  %s762_s7 = sphi %s790_s7, %s1227_s7   ;;  %s758_s6 = sphi %s788_s6, %s1226_s6  }
   0x6   : > { %s813_s12 = sadd.s32 1, %s770_s9   ;;  %s24_s13 = sadd.s32 1, %s766_s8 }
   0x7   : > { %s21_s14 = ssub.s32 %s770_s9, %s813_s12  ;;  %p31_p0 = scmp.ne.s32.totalorder %s766_s8, %s762_s7 }
   0x8   : > { %p22_p1 = scmp.eq.s32.totalorder %s21_s14, 0  ;;  %p32_p2 = scmp.eq.s32.totalorder %s770_s9, 0 }
   0x9   : > { %p37_p3 = scmp.ne.s32.totalorder %s762_s7, %s758_s6  ;;  %p38_p4 = scmp.eq.s32.totalorder %s809_s10, 0 }
   0xa   : > { %s825_s15 = scalar_select %p22_p1, %s766_s8, %s24_s13  }
   0xb   : > { %p827_p5 = por %p32_p2, %p31_p0  ;;  %p831_p6 = por %p38_p4, %p37_p3 }
   0xc   : > { %p61_p7 = scmp.eq.s32.totalorder %s809_s10, 1  ;;  %p67_p8 = scmp.eq.s32.totalorder %s608_s11, 1 }
   0xd   : > { %p636_p10 = scmp.lt.s32.totalorder %s770_s9, 2  ;;  %s87_s20 = sand.u32 1, %s766_s8  }
   0xe   : > { %p838_p11 = por %p61_p7, %p31_p0  ;;  %p842_p12 = por %p67_p8, %p37_p3 }
   0xf   : > { %s622_s21 = sshll.u32 %s770_s9, 14  ;;  %s611_s22 = sshll.u32 %s87_s20, 10 }
  0x10   : > { %s1220_s18 = scalar_select %p838_p11, 1, 0 }
  0x11   : > { %s1221_s19 = scalar_select %p842_p12, 1, 0 }
  0x12   : > { %s851_s25 = scalar_lea.hbm %s1215_s0, %s622_s21  ;;  %s91_s26 = scalar_lea.vmem [#allocation2], %s611_s22 }
  0x13   : > { %s98_s27 = sshll.u32 %s91_s26, 4  ;;  %p855_p13 = pnand %p636_p10, %p827_p5  ;;  %s859_s27 = int_to_ptr.vmem [resolvable:$true] %s98_s27 }
  0x14   : > { %s861_s29 = scalar_lea.sflag [#allocation3], %s87_s20  ;;  %s674_s30 = scalar_lea.hbm %s851_s25, 16384 }
  0x15   : > { %p675_p0 = scmp.ne.s32.totalorder %s851_s25, %s674_s30  ;;  %p676_p1 = pneg %p855_p13 }
  0x16   : > { %s679_s4 = scalar_lea.hbm %s1215_s0, 32768  ;;  %p680_p4 = scmp.lt.u32.totalorder %s851_s25, %s1215_s0 }
  0x17   : > { %p677_p2 = pnand %p676_p1, %p675_p0  ;;  %p681_p5 = scmp.lt.u32.totalorder %s679_s4, %s674_s30 }
  0x18   : > { %p683_p8 = scmp.lt.u32.totalorder %s674_s30, %s851_s25 }
  0x19   : > { %p678_p3 = pneg %p677_p2  ;;  %p682_p7 = por %p681_p5, %p680_p4 }
  0x1b   : > { %p684_p10 = por %p683_p8, %p682_p7 }
  0x1d   : > { %p685_p9 = pnand %p684_p10, %p678_p3 }
  0x1f   : > { %688 = shalt.err (!%p685_p9)
}
  0x20   : > { %s689_s13 = scalar_lea.vmem %s859_s27, 16384  ;;  %s772_s14 = smov [#allocation2]  }
  0x21   : > { %p690_p0 = scmp.ne.s32.totalorder %s859_s27, %s689_s13  ;;  %s694_s16 = sshll.u32 %s772_s14, 4  ;;  %s695_s16 = int_to_ptr.vmem [resolvable:$false] %s694_s16 }
  0x22   : > { %s696_s20 = scalar_lea.vmem %s695_s16, 32768  ;;  %p697_p11 = scmp.lt.s32.totalorder %s859_s27, %s695_s16 }
  0x23   : > { %p692_p2 = pnand %p690_p0, %p676_p1  ;;  %p698_p4 = scmp.lt.s32.totalorder %s696_s20, %s689_s13 }
  0x25   : > { %p693_p12 = pneg %p692_p2  ;;  %p699_p5 = por %p698_p4, %p697_p11 }
  0x27   : > { %p700_p7 = pnand %p699_p5, %p693_p12 }
  0x29   : > { %703 = shalt.err (!%p700_p7)
}
  0x2a   : > { %s773_s21 = smov 128   ;;  %s774_s22 = smov 8  }
  0x2b   : > { %631 = dma.hbm_to_vmem [thread:$0]  (!%p855_p13), %s851_s25, 16384, %s859_s27, %s861_s29, %s773_s21, %s773_s21, %s774_s22  }
  0x2c   : > { %p614_p9 = scmp.ge.s32.totalorder %s770_s9, 1  ;;  %p106_p1 = scmp.lt.s32.totalorder %s770_s9, 3 }
  0x2e   : > { %p107_p3 = pnand %p614_p9, %p106_p1 }
  0x2f   : > { %s892_s23 = sand.u32 (!%p107_p3), 1, %s762_s7  }
  0x30   : > { %110 = sbr.rel (%p107_p3) target bundleno = 144 (0x90), region = 24  ;;  %s615_s24 = sshll.u32 (!%p107_p3), %s892_s23, 10 }
  0x31   : > { %s113_s26 = scalar_lea.sflag (!%p107_p3), [#allocation3], %s892_s23  ;;  %s896_s30 = scalar_lea.vmem (!%p107_p3), [#allocation2], %s615_s24 }
  0x37   : > { %749 = dma.done.wait (%p831_p6), %s113_s26, 16384  }
  0x38   : > { %751 = vsyncadd (%p831_p6), %s113_s26, 4294950912  ;;  %v137_v0 = vld [vmem:[%s896_s30] sm:$0xff]  ;;  %v138_v1 = vld [vmem:[%s896_s30 + $0x8] sm:$0xff]  ;;  %s623_s25 = sshll.u32 %s809_s10, 14  ;;  %s906_s27 = scalar_lea.vmem [#allocation5], %s615_s24 }
  0x39   : > { %v139_v2 = vld [vmem:[%s896_s30 + $0x10] sm:$0xff]  ;;  %s535_s17 = sshll.u32 %s906_s27, 4  ;;  %v265_v3 = vmax.f32 %v137_v0, 0.0  ;;  %v266_v4 = vmax.f32 %v138_v1, 0.0  ;;  %v140_v6 = vld [vmem:[%s896_s30 + $0x18] sm:$0xff]  ;;  %v141_v7 = vld [vmem:[%s896_s30 + $0x20] sm:$0xff]  ;;  %s1159_s2 = scalar_lea.hbm %s1216_s1, %s623_s25  ;;  %s1163_s17 = int_to_ptr.vmem [resolvable:$true] %s535_s17 }
  0x3a   : > { %v267_v5 = vmax.f32 %v139_v2, 0.0  ;;  %v142_v8 = vld [vmem:[%s896_s30 + $0x28] sm:$0xff]  ;;  %v268_v9 = vmax.f32 %v140_v6, 0.0  ;;  %v269_v10 = vmax.f32 %v141_v7, 0.0  ;;  %v143_v12 = vld [vmem:[%s896_s30 + $0x30] sm:$0xff]  ;;  %v144_v13 = vld [vmem:[%s896_s30 + $0x38] sm:$0xff] }
  0x3b   : > { %v270_v11 = vmax.f32 %v142_v8, 0.0  ;;  %v145_v14 = vld [vmem:[%s896_s30 + $0x40] sm:$0xff]  ;;  %393 = vst [vmem:[%s906_s27] sm:$0xff] %v265_v3  ;;  %394 = vst [vmem:[%s906_s27 + $0x8] sm:$0xff] %v266_v4  ;;  %v271_v15 = vmax.f32 %v143_v12, 0.0  ;;  %v272_v16 = vmax.f32 %v144_v13, 0.0  ;;  %v146_v18 = vld [vmem:[%s896_s30 + $0x48] sm:$0xff] }
  0x3c   : > { %395 = vst [vmem:[%s906_s27 + $0x10] sm:$0xff] %v267_v5  ;;  %v273_v17 = vmax.f32 %v145_v14, 0.0  ;;  %v147_v19 = vld [vmem:[%s896_s30 + $0x50] sm:$0xff]  ;;  %v148_v20 = vld [vmem:[%s896_s30 + $0x58] sm:$0xff]  ;;  %396 = vst [vmem:[%s906_s27 + $0x18] sm:$0xff] %v268_v9  ;;  %v274_v21 = vmax.f32 %v146_v18, 0.0 }
  0x3d   : > { %397 = vst [vmem:[%s906_s27 + $0x20] sm:$0xff] %v269_v10  ;;  %398 = vst [vmem:[%s906_s27 + $0x28] sm:$0xff] %v270_v11  ;;  %v275_v22 = vmax.f32 %v147_v19, 0.0  ;;  %v276_v23 = vmax.f32 %v148_v20, 0.0  ;;  %v149_v24 = vld [vmem:[%s896_s30 + $0x60] sm:$0xff]  ;;  %v150_v25 = vld [vmem:[%s896_s30 + $0x68] sm:$0xff] }
  0x3e   : > { %v151_v26 = vld [vmem:[%s896_s30 + $0x70] sm:$0xff]  ;;  %399 = vst [vmem:[%s906_s27 + $0x30] sm:$0xff] %v271_v15  ;;  %400 = vst [vmem:[%s906_s27 + $0x38] sm:$0xff] %v272_v16  ;;  %v277_v27 = vmax.f32 %v149_v24, 0.0  ;;  %v278_v28 = vmax.f32 %v150_v25, 0.0  ;;  %v152_v30 = vld [vmem:[%s896_s30 + $0x78] sm:$0xff] }
  0x3f   : > { %401 = vst [vmem:[%s906_s27 + $0x40] sm:$0xff] %v273_v17  ;;  %v279_v29 = vmax.f32 %v151_v26, 0.0  ;;  %v153_v31 = vld [vmem:[%s896_s30 + $0x80] sm:$0xff]  ;;  %v154_v32 = vld [vmem:[%s896_s30 + $0x88] sm:$0xff]  ;;  %402 = vst [vmem:[%s906_s27 + $0x48] sm:$0xff] %v274_v21  ;;  %v280_v33 = vmax.f32 %v152_v30, 0.0 }
  0x40   : > { %403 = vst [vmem:[%s906_s27 + $0x50] sm:$0xff] %v275_v22  ;;  %404 = vst [vmem:[%s906_s27 + $0x58] sm:$0xff] %v276_v23  ;;  %v281_v34 = vmax.f32 %v153_v31, 0.0  ;;  %v282_v35 = vmax.f32 %v154_v32, 0.0  ;;  %v155_v36 = vld [vmem:[%s896_s30 + $0x90] sm:$0xff]  ;;  %v156_v37 = vld [vmem:[%s896_s30 + $0x98] sm:$0xff] }
  0x41   : > { %v157_v38 = vld [vmem:[%s896_s30 + $0xa0] sm:$0xff]  ;;  %405 = vst [vmem:[%s906_s27 + $0x60] sm:$0xff] %v277_v27  ;;  %406 = vst [vmem:[%s906_s27 + $0x68] sm:$0xff] %v278_v28  ;;  %v283_v39 = vmax.f32 %v155_v36, 0.0  ;;  %v284_v40 = vmax.f32 %v156_v37, 0.0  ;;  %v158_v42 = vld [vmem:[%s896_s30 + $0xa8] sm:$0xff] }
  0x42   : > { %407 = vst [vmem:[%s906_s27 + $0x70] sm:$0xff] %v279_v29  ;;  %v285_v41 = vmax.f32 %v157_v38, 0.0  ;;  %v159_v43 = vld [vmem:[%s896_s30 + $0xb0] sm:$0xff]  ;;  %v160_v44 = vld [vmem:[%s896_s30 + $0xb8] sm:$0xff]  ;;  %408 = vst [vmem:[%s906_s27 + $0x78] sm:$0xff] %v280_v33  ;;  %v286_v45 = vmax.f32 %v158_v42, 0.0 }
  0x43   : > { %409 = vst [vmem:[%s906_s27 + $0x80] sm:$0xff] %v281_v34  ;;  %410 = vst [vmem:[%s906_s27 + $0x88] sm:$0xff] %v282_v35  ;;  %v287_v46 = vmax.f32 %v159_v43, 0.0  ;;  %v288_v47 = vmax.f32 %v160_v44, 0.0  ;;  %v161_v48 = vld [vmem:[%s896_s30 + $0xc0] sm:$0xff]  ;;  %v162_v49 = vld [vmem:[%s896_s30 + $0xc8] sm:$0xff] }
  0x44   : > { %v163_v50 = vld [vmem:[%s896_s30 + $0xd0] sm:$0xff]  ;;  %411 = vst [vmem:[%s906_s27 + $0x90] sm:$0xff] %v283_v39  ;;  %412 = vst [vmem:[%s906_s27 + $0x98] sm:$0xff] %v284_v40  ;;  %v289_v51 = vmax.f32 %v161_v48, 0.0  ;;  %v290_v52 = vmax.f32 %v162_v49, 0.0  ;;  %v164_v54 = vld [vmem:[%s896_s30 + $0xd8] sm:$0xff] }
  0x45   : > { %413 = vst [vmem:[%s906_s27 + $0xa0] sm:$0xff] %v285_v41  ;;  %v291_v53 = vmax.f32 %v163_v50, 0.0  ;;  %v165_v55 = vld [vmem:[%s896_s30 + $0xe0] sm:$0xff]  ;;  %v166_v56 = vld [vmem:[%s896_s30 + $0xe8] sm:$0xff]  ;;  %414 = vst [vmem:[%s906_s27 + $0xa8] sm:$0xff] %v286_v45  ;;  %v292_v57 = vmax.f32 %v164_v54, 0.0 }
  0x46   : > { %415 = vst [vmem:[%s906_s27 + $0xb0] sm:$0xff] %v287_v46  ;;  %416 = vst [vmem:[%s906_s27 + $0xb8] sm:$0xff] %v288_v47  ;;  %v293_v58 = vmax.f32 %v165_v55, 0.0  ;;  %v294_v59 = vmax.f32 %v166_v56, 0.0  ;;  %v167_v60 = vld [vmem:[%s896_s30 + $0xf0] sm:$0xff]  ;;  %v168_v61 = vld [vmem:[%s896_s30 + $0xf8] sm:$0xff] }
  0x47   : > { %v169_v62 = vld [vmem:[%s896_s30 + $0x100] sm:$0xff]  ;;  %417 = vst [vmem:[%s906_s27 + $0xc0] sm:$0xff] %v289_v51  ;;  %418 = vst [vmem:[%s906_s27 + $0xc8] sm:$0xff] %v290_v52  ;;  %v295_v63 = vmax.f32 %v167_v60, 0.0  ;;  %v296_v0 = vmax.f32 %v168_v61, 0.0  ;;  %v170_v2 = vld [vmem:[%s896_s30 + $0x108] sm:$0xff] }
  0x48   : > { %419 = vst [vmem:[%s906_s27 + $0xd0] sm:$0xff] %v291_v53  ;;  %v297_v1 = vmax.f32 %v169_v62, 0.0  ;;  %v171_v3 = vld [vmem:[%s896_s30 + $0x110] sm:$0xff]  ;;  %v172_v4 = vld [vmem:[%s896_s30 + $0x118] sm:$0xff]  ;;  %420 = vst [vmem:[%s906_s27 + $0xd8] sm:$0xff] %v292_v57  ;;  %v298_v5 = vmax.f32 %v170_v2, 0.0 }
  0x49   : > { %421 = vst [vmem:[%s906_s27 + $0xe0] sm:$0xff] %v293_v58  ;;  %422 = vst [vmem:[%s906_s27 + $0xe8] sm:$0xff] %v294_v59  ;;  %v299_v6 = vmax.f32 %v171_v3, 0.0  ;;  %v300_v7 = vmax.f32 %v172_v4, 0.0  ;;  %v173_v8 = vld [vmem:[%s896_s30 + $0x120] sm:$0xff]  ;;  %v174_v9 = vld [vmem:[%s896_s30 + $0x128] sm:$0xff] }
  0x4a   : > { %v175_v10 = vld [vmem:[%s896_s30 + $0x130] sm:$0xff]  ;;  %423 = vst [vmem:[%s906_s27 + $0xf0] sm:$0xff] %v295_v63  ;;  %424 = vst [vmem:[%s906_s27 + $0xf8] sm:$0xff] %v296_v0  ;;  %v301_v11 = vmax.f32 %v173_v8, 0.0  ;;  %v302_v12 = vmax.f32 %v174_v9, 0.0  ;;  %v176_v14 = vld [vmem:[%s896_s30 + $0x138] sm:$0xff] }
  0x4b   : > { %425 = vst [vmem:[%s906_s27 + $0x100] sm:$0xff] %v297_v1  ;;  %v303_v13 = vmax.f32 %v175_v10, 0.0  ;;  %v177_v15 = vld [vmem:[%s896_s30 + $0x140] sm:$0xff]  ;;  %v178_v16 = vld [vmem:[%s896_s30 + $0x148] sm:$0xff]  ;;  %426 = vst [vmem:[%s906_s27 + $0x108] sm:$0xff] %v298_v5  ;;  %v304_v17 = vmax.f32 %v176_v14, 0.0 }
  0x4c   : > { %427 = vst [vmem:[%s906_s27 + $0x110] sm:$0xff] %v299_v6  ;;  %428 = vst [vmem:[%s906_s27 + $0x118] sm:$0xff] %v300_v7  ;;  %v305_v18 = vmax.f32 %v177_v15, 0.0  ;;  %v306_v19 = vmax.f32 %v178_v16, 0.0  ;;  %v179_v20 = vld [vmem:[%s896_s30 + $0x150] sm:$0xff]  ;;  %v180_v21 = vld [vmem:[%s896_s30 + $0x158] sm:$0xff] }
  0x4d   : > { %v181_v22 = vld [vmem:[%s896_s30 + $0x160] sm:$0xff]  ;;  %429 = vst [vmem:[%s906_s27 + $0x120] sm:$0xff] %v301_v11  ;;  %430 = vst [vmem:[%s906_s27 + $0x128] sm:$0xff] %v302_v12  ;;  %v307_v23 = vmax.f32 %v179_v20, 0.0  ;;  %v308_v24 = vmax.f32 %v180_v21, 0.0  ;;  %v182_v26 = vld [vmem:[%s896_s30 + $0x168] sm:$0xff] }
  0x4e   : > { %431 = vst [vmem:[%s906_s27 + $0x130] sm:$0xff] %v303_v13  ;;  %v309_v25 = vmax.f32 %v181_v22, 0.0  ;;  %v183_v27 = vld [vmem:[%s896_s30 + $0x170] sm:$0xff]  ;;  %v184_v28 = vld [vmem:[%s896_s30 + $0x178] sm:$0xff]  ;;  %432 = vst [vmem:[%s906_s27 + $0x138] sm:$0xff] %v304_v17  ;;  %v310_v29 = vmax.f32 %v182_v26, 0.0 }
  0x4f   : > { %433 = vst [vmem:[%s906_s27 + $0x140] sm:$0xff] %v305_v18  ;;  %434 = vst [vmem:[%s906_s27 + $0x148] sm:$0xff] %v306_v19  ;;  %v311_v30 = vmax.f32 %v183_v27, 0.0  ;;  %v312_v31 = vmax.f32 %v184_v28, 0.0  ;;  %v185_v32 = vld [vmem:[%s896_s30 + $0x180] sm:$0xff]  ;;  %v186_v33 = vld [vmem:[%s896_s30 + $0x188] sm:$0xff] }
  0x50   : > { %v187_v34 = vld [vmem:[%s896_s30 + $0x190] sm:$0xff]  ;;  %435 = vst [vmem:[%s906_s27 + $0x150] sm:$0xff] %v307_v23  ;;  %436 = vst [vmem:[%s906_s27 + $0x158] sm:$0xff] %v308_v24  ;;  %v313_v35 = vmax.f32 %v185_v32, 0.0  ;;  %v314_v36 = vmax.f32 %v186_v33, 0.0  ;;  %v188_v38 = vld [vmem:[%s896_s30 + $0x198] sm:$0xff] }
  0x51   : > { %437 = vst [vmem:[%s906_s27 + $0x160] sm:$0xff] %v309_v25  ;;  %v315_v37 = vmax.f32 %v187_v34, 0.0  ;;  %v189_v39 = vld [vmem:[%s896_s30 + $0x1a0] sm:$0xff]  ;;  %v190_v40 = vld [vmem:[%s896_s30 + $0x1a8] sm:$0xff]  ;;  %438 = vst [vmem:[%s906_s27 + $0x168] sm:$0xff] %v310_v29  ;;  %v316_v41 = vmax.f32 %v188_v38, 0.0 }
  0x52   : > { %439 = vst [vmem:[%s906_s27 + $0x170] sm:$0xff] %v311_v30  ;;  %440 = vst [vmem:[%s906_s27 + $0x178] sm:$0xff] %v312_v31  ;;  %v317_v42 = vmax.f32 %v189_v39, 0.0  ;;  %v318_v43 = vmax.f32 %v190_v40, 0.0  ;;  %v191_v44 = vld [vmem:[%s896_s30 + $0x1b0] sm:$0xff]  ;;  %v192_v45 = vld [vmem:[%s896_s30 + $0x1b8] sm:$0xff] }
  0x53   : > { %v193_v46 = vld [vmem:[%s896_s30 + $0x1c0] sm:$0xff]  ;;  %441 = vst [vmem:[%s906_s27 + $0x180] sm:$0xff] %v313_v35  ;;  %442 = vst [vmem:[%s906_s27 + $0x188] sm:$0xff] %v314_v36  ;;  %v319_v47 = vmax.f32 %v191_v44, 0.0  ;;  %v320_v48 = vmax.f32 %v192_v45, 0.0  ;;  %v194_v50 = vld [vmem:[%s896_s30 + $0x1c8] sm:$0xff] }
  0x54   : > { %443 = vst [vmem:[%s906_s27 + $0x190] sm:$0xff] %v315_v37  ;;  %v321_v49 = vmax.f32 %v193_v46, 0.0  ;;  %v195_v51 = vld [vmem:[%s896_s30 + $0x1d0] sm:$0xff]  ;;  %v196_v52 = vld [vmem:[%s896_s30 + $0x1d8] sm:$0xff]  ;;  %444 = vst [vmem:[%s906_s27 + $0x198] sm:$0xff] %v316_v41  ;;  %v322_v53 = vmax.f32 %v194_v50, 0.0 }
  0x55   : > { %445 = vst [vmem:[%s906_s27 + $0x1a0] sm:$0xff] %v317_v42  ;;  %446 = vst [vmem:[%s906_s27 + $0x1a8] sm:$0xff] %v318_v43  ;;  %v323_v54 = vmax.f32 %v195_v51, 0.0  ;;  %v324_v55 = vmax.f32 %v196_v52, 0.0  ;;  %v197_v56 = vld [vmem:[%s896_s30 + $0x1e0] sm:$0xff]  ;;  %v198_v57 = vld [vmem:[%s896_s30 + $0x1e8] sm:$0xff] }
  0x56   : > { %v199_v58 = vld [vmem:[%s896_s30 + $0x1f0] sm:$0xff]  ;;  %447 = vst [vmem:[%s906_s27 + $0x1b0] sm:$0xff] %v319_v47  ;;  %448 = vst [vmem:[%s906_s27 + $0x1b8] sm:$0xff] %v320_v48  ;;  %v325_v59 = vmax.f32 %v197_v56, 0.0  ;;  %v326_v60 = vmax.f32 %v198_v57, 0.0  ;;  %v200_v62 = vld [vmem:[%s896_s30 + $0x1f8] sm:$0xff] }
  0x57   : > { %449 = vst [vmem:[%s906_s27 + $0x1c0] sm:$0xff] %v321_v49  ;;  %v327_v61 = vmax.f32 %v199_v58, 0.0  ;;  %v201_v63 = vld [vmem:[%s896_s30 + $0x200] sm:$0xff]  ;;  %v202_v0 = vld [vmem:[%s896_s30 + $0x208] sm:$0xff]  ;;  %450 = vst [vmem:[%s906_s27 + $0x1c8] sm:$0xff] %v322_v53  ;;  %v328_v1 = vmax.f32 %v200_v62, 0.0 }
  0x58   : > { %451 = vst [vmem:[%s906_s27 + $0x1d0] sm:$0xff] %v323_v54  ;;  %452 = vst [vmem:[%s906_s27 + $0x1d8] sm:$0xff] %v324_v55  ;;  %v329_v2 = vmax.f32 %v201_v63, 0.0  ;;  %v330_v3 = vmax.f32 %v202_v0, 0.0  ;;  %v203_v4 = vld [vmem:[%s896_s30 + $0x210] sm:$0xff]  ;;  %v204_v5 = vld [vmem:[%s896_s30 + $0x218] sm:$0xff] }
  0x59   : > { %v205_v6 = vld [vmem:[%s896_s30 + $0x220] sm:$0xff]  ;;  %453 = vst [vmem:[%s906_s27 + $0x1e0] sm:$0xff] %v325_v59  ;;  %454 = vst [vmem:[%s906_s27 + $0x1e8] sm:$0xff] %v326_v60  ;;  %v331_v7 = vmax.f32 %v203_v4, 0.0  ;;  %v332_v8 = vmax.f32 %v204_v5, 0.0  ;;  %v206_v10 = vld [vmem:[%s896_s30 + $0x228] sm:$0xff] }
  0x5a   : > { %455 = vst [vmem:[%s906_s27 + $0x1f0] sm:$0xff] %v327_v61  ;;  %v333_v9 = vmax.f32 %v205_v6, 0.0  ;;  %v207_v11 = vld [vmem:[%s896_s30 + $0x230] sm:$0xff]  ;;  %v208_v12 = vld [vmem:[%s896_s30 + $0x238] sm:$0xff]  ;;  %456 = vst [vmem:[%s906_s27 + $0x1f8] sm:$0xff] %v328_v1  ;;  %v334_v13 = vmax.f32 %v206_v10, 0.0 }
  0x5b   : > { %457 = vst [vmem:[%s906_s27 + $0x200] sm:$0xff] %v329_v2  ;;  %458 = vst [vmem:[%s906_s27 + $0x208] sm:$0xff] %v330_v3  ;;  %v335_v14 = vmax.f32 %v207_v11, 0.0  ;;  %v336_v15 = vmax.f32 %v208_v12, 0.0  ;;  %v209_v16 = vld [vmem:[%s896_s30 + $0x240] sm:$0xff]  ;;  %v210_v17 = vld [vmem:[%s896_s30 + $0x248] sm:$0xff] }
  0x5c   : > { %v211_v18 = vld [vmem:[%s896_s30 + $0x250] sm:$0xff]  ;;  %459 = vst [vmem:[%s906_s27 + $0x210] sm:$0xff] %v331_v7  ;;  %460 = vst [vmem:[%s906_s27 + $0x218] sm:$0xff] %v332_v8  ;;  %v337_v19 = vmax.f32 %v209_v16, 0.0  ;;  %v338_v20 = vmax.f32 %v210_v17, 0.0  ;;  %v212_v22 = vld [vmem:[%s896_s30 + $0x258] sm:$0xff] }
  0x5d   : > { %461 = vst [vmem:[%s906_s27 + $0x220] sm:$0xff] %v333_v9  ;;  %v339_v21 = vmax.f32 %v211_v18, 0.0  ;;  %v213_v23 = vld [vmem:[%s896_s30 + $0x260] sm:$0xff]  ;;  %v214_v24 = vld [vmem:[%s896_s30 + $0x268] sm:$0xff]  ;;  %462 = vst [vmem:[%s906_s27 + $0x228] sm:$0xff] %v334_v13  ;;  %v340_v25 = vmax.f32 %v212_v22, 0.0 }
  0x5e   : > { %463 = vst [vmem:[%s906_s27 + $0x230] sm:$0xff] %v335_v14  ;;  %464 = vst [vmem:[%s906_s27 + $0x238] sm:$0xff] %v336_v15  ;;  %v341_v26 = vmax.f32 %v213_v23, 0.0  ;;  %v342_v27 = vmax.f32 %v214_v24, 0.0  ;;  %v215_v28 = vld [vmem:[%s896_s30 + $0x270] sm:$0xff]  ;;  %v216_v29 = vld [vmem:[%s896_s30 + $0x278] sm:$0xff] }
  0x5f   : > { %v217_v30 = vld [vmem:[%s896_s30 + $0x280] sm:$0xff]  ;;  %465 = vst [vmem:[%s906_s27 + $0x240] sm:$0xff] %v337_v19  ;;  %466 = vst [vmem:[%s906_s27 + $0x248] sm:$0xff] %v338_v20  ;;  %v343_v31 = vmax.f32 %v215_v28, 0.0  ;;  %v344_v32 = vmax.f32 %v216_v29, 0.0  ;;  %v218_v34 = vld [vmem:[%s896_s30 + $0x288] sm:$0xff] }
  0x60   : > { %467 = vst [vmem:[%s906_s27 + $0x250] sm:$0xff] %v339_v21  ;;  %v345_v33 = vmax.f32 %v217_v30, 0.0  ;;  %v219_v35 = vld [vmem:[%s896_s30 + $0x290] sm:$0xff]  ;;  %v220_v36 = vld [vmem:[%s896_s30 + $0x298] sm:$0xff]  ;;  %468 = vst [vmem:[%s906_s27 + $0x258] sm:$0xff] %v340_v25  ;;  %v346_v37 = vmax.f32 %v218_v34, 0.0 }
  0x61   : > { %469 = vst [vmem:[%s906_s27 + $0x260] sm:$0xff] %v341_v26  ;;  %470 = vst [vmem:[%s906_s27 + $0x268] sm:$0xff] %v342_v27  ;;  %v347_v38 = vmax.f32 %v219_v35, 0.0  ;;  %v348_v39 = vmax.f32 %v220_v36, 0.0  ;;  %v221_v40 = vld [vmem:[%s896_s30 + $0x2a0] sm:$0xff]  ;;  %v222_v41 = vld [vmem:[%s896_s30 + $0x2a8] sm:$0xff] }
  0x62   : > { %v223_v42 = vld [vmem:[%s896_s30 + $0x2b0] sm:$0xff]  ;;  %471 = vst [vmem:[%s906_s27 + $0x270] sm:$0xff] %v343_v31  ;;  %472 = vst [vmem:[%s906_s27 + $0x278] sm:$0xff] %v344_v32  ;;  %v349_v43 = vmax.f32 %v221_v40, 0.0  ;;  %v350_v44 = vmax.f32 %v222_v41, 0.0  ;;  %v224_v46 = vld [vmem:[%s896_s30 + $0x2b8] sm:$0xff] }
  0x63   : > { %473 = vst [vmem:[%s906_s27 + $0x280] sm:$0xff] %v345_v33  ;;  %v351_v45 = vmax.f32 %v223_v42, 0.0  ;;  %v225_v47 = vld [vmem:[%s896_s30 + $0x2c0] sm:$0xff]  ;;  %v226_v48 = vld [vmem:[%s896_s30 + $0x2c8] sm:$0xff]  ;;  %474 = vst [vmem:[%s906_s27 + $0x288] sm:$0xff] %v346_v37  ;;  %v352_v49 = vmax.f32 %v224_v46, 0.0 }
  0x64   : > { %475 = vst [vmem:[%s906_s27 + $0x290] sm:$0xff] %v347_v38  ;;  %476 = vst [vmem:[%s906_s27 + $0x298] sm:$0xff] %v348_v39  ;;  %v353_v50 = vmax.f32 %v225_v47, 0.0  ;;  %v354_v51 = vmax.f32 %v226_v48, 0.0  ;;  %v227_v52 = vld [vmem:[%s896_s30 + $0x2d0] sm:$0xff]  ;;  %v228_v53 = vld [vmem:[%s896_s30 + $0x2d8] sm:$0xff] }
  0x65   : > { %v229_v54 = vld [vmem:[%s896_s30 + $0x2e0] sm:$0xff]  ;;  %477 = vst [vmem:[%s906_s27 + $0x2a0] sm:$0xff] %v349_v43  ;;  %478 = vst [vmem:[%s906_s27 + $0x2a8] sm:$0xff] %v350_v44  ;;  %v355_v55 = vmax.f32 %v227_v52, 0.0  ;;  %v356_v56 = vmax.f32 %v228_v53, 0.0  ;;  %v230_v58 = vld [vmem:[%s896_s30 + $0x2e8] sm:$0xff] }
  0x66   : > { %479 = vst [vmem:[%s906_s27 + $0x2b0] sm:$0xff] %v351_v45  ;;  %v357_v57 = vmax.f32 %v229_v54, 0.0  ;;  %v231_v59 = vld [vmem:[%s896_s30 + $0x2f0] sm:$0xff]  ;;  %v232_v60 = vld [vmem:[%s896_s30 + $0x2f8] sm:$0xff]  ;;  %480 = vst [vmem:[%s906_s27 + $0x2b8] sm:$0xff] %v352_v49  ;;  %v358_v61 = vmax.f32 %v230_v58, 0.0 }
  0x67   : > { %481 = vst [vmem:[%s906_s27 + $0x2c0] sm:$0xff] %v353_v50  ;;  %482 = vst [vmem:[%s906_s27 + $0x2c8] sm:$0xff] %v354_v51  ;;  %v359_v62 = vmax.f32 %v231_v59, 0.0  ;;  %v360_v63 = vmax.f32 %v232_v60, 0.0  ;;  %v233_v0 = vld [vmem:[%s896_s30 + $0x300] sm:$0xff]  ;;  %v234_v1 = vld [vmem:[%s896_s30 + $0x308] sm:$0xff] }
  0x68   : > { %v235_v2 = vld [vmem:[%s896_s30 + $0x310] sm:$0xff]  ;;  %483 = vst [vmem:[%s906_s27 + $0x2d0] sm:$0xff] %v355_v55  ;;  %484 = vst [vmem:[%s906_s27 + $0x2d8] sm:$0xff] %v356_v56  ;;  %v361_v3 = vmax.f32 %v233_v0, 0.0  ;;  %v362_v4 = vmax.f32 %v234_v1, 0.0  ;;  %v236_v6 = vld [vmem:[%s896_s30 + $0x318] sm:$0xff] }
  0x69   : > { %485 = vst [vmem:[%s906_s27 + $0x2e0] sm:$0xff] %v357_v57  ;;  %v363_v5 = vmax.f32 %v235_v2, 0.0  ;;  %v237_v7 = vld [vmem:[%s896_s30 + $0x320] sm:$0xff]  ;;  %v238_v8 = vld [vmem:[%s896_s30 + $0x328] sm:$0xff]  ;;  %486 = vst [vmem:[%s906_s27 + $0x2e8] sm:$0xff] %v358_v61  ;;  %v364_v9 = vmax.f32 %v236_v6, 0.0 }
  0x6a   : > { %487 = vst [vmem:[%s906_s27 + $0x2f0] sm:$0xff] %v359_v62  ;;  %488 = vst [vmem:[%s906_s27 + $0x2f8] sm:$0xff] %v360_v63  ;;  %v365_v10 = vmax.f32 %v237_v7, 0.0  ;;  %v366_v11 = vmax.f32 %v238_v8, 0.0  ;;  %v239_v12 = vld [vmem:[%s896_s30 + $0x330] sm:$0xff]  ;;  %v240_v13 = vld [vmem:[%s896_s30 + $0x338] sm:$0xff] }
  0x6b   : > { %v241_v14 = vld [vmem:[%s896_s30 + $0x340] sm:$0xff]  ;;  %489 = vst [vmem:[%s906_s27 + $0x300] sm:$0xff] %v361_v3  ;;  %490 = vst [vmem:[%s906_s27 + $0x308] sm:$0xff] %v362_v4  ;;  %v367_v15 = vmax.f32 %v239_v12, 0.0  ;;  %v368_v16 = vmax.f32 %v240_v13, 0.0  ;;  %v242_v18 = vld [vmem:[%s896_s30 + $0x348] sm:$0xff] }
  0x6c   : > { %491 = vst [vmem:[%s906_s27 + $0x310] sm:$0xff] %v363_v5  ;;  %v369_v17 = vmax.f32 %v241_v14, 0.0  ;;  %v243_v19 = vld [vmem:[%s896_s30 + $0x350] sm:$0xff]  ;;  %v244_v20 = vld [vmem:[%s896_s30 + $0x358] sm:$0xff]  ;;  %492 = vst [vmem:[%s906_s27 + $0x318] sm:$0xff] %v364_v9  ;;  %v370_v21 = vmax.f32 %v242_v18, 0.0 }
  0x6d   : > { %493 = vst [vmem:[%s906_s27 + $0x320] sm:$0xff] %v365_v10  ;;  %494 = vst [vmem:[%s906_s27 + $0x328] sm:$0xff] %v366_v11  ;;  %v371_v22 = vmax.f32 %v243_v19, 0.0  ;;  %v372_v23 = vmax.f32 %v244_v20, 0.0  ;;  %v245_v24 = vld [vmem:[%s896_s30 + $0x360] sm:$0xff]  ;;  %v246_v25 = vld [vmem:[%s896_s30 + $0x368] sm:$0xff] }
  0x6e   : > { %v247_v26 = vld [vmem:[%s896_s30 + $0x370] sm:$0xff]  ;;  %495 = vst [vmem:[%s906_s27 + $0x330] sm:$0xff] %v367_v15  ;;  %496 = vst [vmem:[%s906_s27 + $0x338] sm:$0xff] %v368_v16  ;;  %v373_v27 = vmax.f32 %v245_v24, 0.0  ;;  %v374_v28 = vmax.f32 %v246_v25, 0.0  ;;  %v248_v30 = vld [vmem:[%s896_s30 + $0x378] sm:$0xff] }
  0x6f   : > { %497 = vst [vmem:[%s906_s27 + $0x340] sm:$0xff] %v369_v17  ;;  %v375_v29 = vmax.f32 %v247_v26, 0.0  ;;  %v249_v31 = vld [vmem:[%s896_s30 + $0x380] sm:$0xff]  ;;  %v250_v32 = vld [vmem:[%s896_s30 + $0x388] sm:$0xff]  ;;  %498 = vst [vmem:[%s906_s27 + $0x348] sm:$0xff] %v370_v21  ;;  %v376_v33 = vmax.f32 %v248_v30, 0.0 }
  0x70   : > { %499 = vst [vmem:[%s906_s27 + $0x350] sm:$0xff] %v371_v22  ;;  %500 = vst [vmem:[%s906_s27 + $0x358] sm:$0xff] %v372_v23  ;;  %v377_v34 = vmax.f32 %v249_v31, 0.0  ;;  %v378_v35 = vmax.f32 %v250_v32, 0.0  ;;  %v251_v36 = vld [vmem:[%s896_s30 + $0x390] sm:$0xff]  ;;  %v252_v37 = vld [vmem:[%s896_s30 + $0x398] sm:$0xff] }
  0x71   : > { %v253_v38 = vld [vmem:[%s896_s30 + $0x3a0] sm:$0xff]  ;;  %501 = vst [vmem:[%s906_s27 + $0x360] sm:$0xff] %v373_v27  ;;  %502 = vst [vmem:[%s906_s27 + $0x368] sm:$0xff] %v374_v28  ;;  %v379_v39 = vmax.f32 %v251_v36, 0.0  ;;  %v380_v40 = vmax.f32 %v252_v37, 0.0  ;;  %v254_v42 = vld [vmem:[%s896_s30 + $0x3a8] sm:$0xff] }
  0x72   : > { %503 = vst [vmem:[%s906_s27 + $0x370] sm:$0xff] %v375_v29  ;;  %v381_v41 = vmax.f32 %v253_v38, 0.0  ;;  %v255_v43 = vld [vmem:[%s896_s30 + $0x3b0] sm:$0xff]  ;;  %v256_v44 = vld [vmem:[%s896_s30 + $0x3b8] sm:$0xff]  ;;  %504 = vst [vmem:[%s906_s27 + $0x378] sm:$0xff] %v376_v33  ;;  %v382_v45 = vmax.f32 %v254_v42, 0.0 }
  0x73   : > { %505 = vst [vmem:[%s906_s27 + $0x380] sm:$0xff] %v377_v34  ;;  %506 = vst [vmem:[%s906_s27 + $0x388] sm:$0xff] %v378_v35  ;;  %v383_v46 = vmax.f32 %v255_v43, 0.0  ;;  %v384_v47 = vmax.f32 %v256_v44, 0.0  ;;  %v257_v48 = vld [vmem:[%s896_s30 + $0x3c0] sm:$0xff]  ;;  %v258_v49 = vld [vmem:[%s896_s30 + $0x3c8] sm:$0xff] }
  0x74   : > { %v259_v50 = vld [vmem:[%s896_s30 + $0x3d0] sm:$0xff]  ;;  %507 = vst [vmem:[%s906_s27 + $0x390] sm:$0xff] %v379_v39  ;;  %508 = vst [vmem:[%s906_s27 + $0x398] sm:$0xff] %v380_v40  ;;  %v385_v51 = vmax.f32 %v257_v48, 0.0  ;;  %v386_v52 = vmax.f32 %v258_v49, 0.0  ;;  %v260_v54 = vld [vmem:[%s896_s30 + $0x3d8] sm:$0xff] }
  0x75   : > { %509 = vst [vmem:[%s906_s27 + $0x3a0] sm:$0xff] %v381_v41  ;;  %v387_v53 = vmax.f32 %v259_v50, 0.0  ;;  %v261_v55 = vld [vmem:[%s896_s30 + $0x3e0] sm:$0xff]  ;;  %v262_v56 = vld [vmem:[%s896_s30 + $0x3e8] sm:$0xff]  ;;  %510 = vst [vmem:[%s906_s27 + $0x3a8] sm:$0xff] %v382_v45  ;;  %v388_v57 = vmax.f32 %v260_v54, 0.0 }
  0x76   : > { %511 = vst [vmem:[%s906_s27 + $0x3b0] sm:$0xff] %v383_v46  ;;  %512 = vst [vmem:[%s906_s27 + $0x3b8] sm:$0xff] %v384_v47  ;;  %v389_v58 = vmax.f32 %v261_v55, 0.0  ;;  %v390_v59 = vmax.f32 %v262_v56, 0.0  ;;  %v263_v60 = vld [vmem:[%s896_s30 + $0x3f0] sm:$0xff]  ;;  %v264_v61 = vld [vmem:[%s896_s30 + $0x3f8] sm:$0xff] }
  0x77   : > { %513 = vst [vmem:[%s906_s27 + $0x3c0] sm:$0xff] %v385_v51  ;;  %514 = vst [vmem:[%s906_s27 + $0x3c8] sm:$0xff] %v386_v52  ;;  %v391_v62 = vmax.f32 %v263_v60, 0.0  ;;  %v392_v63 = vmax.f32 %v264_v61, 0.0  ;;  %s522_s10 = scalar_lea.sflag [#allocation4], %s892_s23  ;;  %s704_s3 = scalar_lea.vmem %s1163_s17, 16384 }
  0x78   : > { %515 = vst [vmem:[%s906_s27 + $0x3d0] sm:$0xff] %v387_v53  ;;  %516 = vst [vmem:[%s906_s27 + $0x3d8] sm:$0xff] %v388_v57  ;;  %p705_p6 = scmp.ne.s32.totalorder %s1163_s17, %s704_s3  ;;  %p1223_p11 = scmp.ne.s32.totalorder %s1220_s18, 0 }
  0x79   : > { %517 = vst [vmem:[%s906_s27 + $0x3e0] sm:$0xff] %v389_v58  ;;  %518 = vst [vmem:[%s906_s27 + $0x3e8] sm:$0xff] %v390_v59  ;;  %s775_s4 = smov [#allocation5]  }
  0x7a   : > { %519 = vst [vmem:[%s906_s27 + $0x3f0] sm:$0xff] %v391_v62  ;;  %520 = vst [vmem:[%s906_s27 + $0x3f8] sm:$0xff] %v392_v63  ;;  %p706_p12 = pnand %p705_p6, %p1223_p11  ;;  %s708_s5 = sshll.u32 %s775_s4, 4  ;;  %s709_s5 = int_to_ptr.vmem [resolvable:$false] %s708_s5 }
  0x7b   : > { %s710_s11 = scalar_lea.vmem %s709_s5, 32768  ;;  %p711_p8 = scmp.lt.s32.totalorder %s1163_s17, %s709_s5 }
  0x7c   : > { %p707_p13 = pneg %p706_p12  ;;  %p712_p10 = scmp.lt.s32.totalorder %s710_s11, %s704_s3 }
  0x7e   : > { %p713_p0 = por %p712_p10, %p711_p8 }
  0x80   : > { %p714_p2 = pnand %p713_p0, %p707_p13 }
  0x82   : > { %717 = shalt.err (!%p714_p2)
}
  0x83   : > { %s718_s13 = scalar_lea.hbm %s1159_s2, 16384  ;;  %s722_s20 = scalar_lea.hbm %s1216_s1, 32768 }
  0x84   : > { %p719_p4 = scmp.ne.s32.totalorder %s1159_s2, %s718_s13  ;;  %p723_p9 = scmp.lt.u32.totalorder %s1159_s2, %s1216_s1 }
  0x85   : > { %p724_p1 = scmp.lt.u32.totalorder %s722_s20, %s718_s13  ;;  %p726_p6 = scmp.lt.u32.totalorder %s718_s13, %s1159_s2 }
  0x86   : > { %p720_p5 = pnand %p719_p4, %p1223_p11 }
  0x87   : > { %p725_p3 = por %p724_p1, %p723_p9 }
  0x88   : > { %p721_p7 = pneg %p720_p5 }
  0x89   : > { %p727_p12 = por %p726_p6, %p725_p3 }
  0x8b   : > { %p728_p13 = pnand %p727_p12, %p721_p7 }
  0x8d   : > { %731 = shalt.err (!%p728_p13)
}
  0x8e   : > { %s776_s24 = smov 128   ;;  %s777_s26 = smov 8  }
  0x8f   : > { %626 = dma.vmem_to_hbm [thread:$0]  (%p1223_p11), %s1163_s17, 16384, %s1159_s2, %s522_s10, %s776_s24, %s776_s24, %s777_s26  }
  0x90 PF: > { %s550_s30 = sand.u32 1, %s758_s6   ;;  %p1224_p8 = scmp.ne.s32.totalorder %s1221_s19, 0 }
  0x91   : > { %p1225_p10 = scmp.ge.s32.totalorder %s770_s9, 2  ;;  %s551_s25 = scalar_lea.sflag [#allocation4], %s550_s30 }
  0x93   : > { %p633_p0 = pnand %p1225_p10, %p1224_p8 }
  0x95   : > { %753 = dma.done.wait (!%p633_p0), %s551_s25, 16384  }
  0x96   : > { %755 = vsyncadd (!%p633_p0), %s551_s25, 4294950912  ;;  %p14_p2 = scmp.ge.s32.totalorder %s813_s12, 4   ;;  %s1226_s6 = smov %s762_s7 }
  0x97   : > { %s1227_s7 = smov %s766_s8  ;;  %s1228_s8 = smov %s825_s15 }
  0x98   : > { %s1229_s9 = smov %s813_s12  ;;  %16 = sbr.rel (!%p14_p2) target bundleno = 5 (0x5), region = 69 }
  0x9f   :  { %556 = vsyncpa [#allocation3], 1 }
  0xa0   :  { %558 = vsyncpa [#allocation3 + $0x1], 1 }
  0xa1   :  { %559 = vsyncpa [#allocation4], 1 }
  0xa2   :  { %561 = vsyncpa [#allocation4 + $0x1], 1 }

</bundles_post_ra>
